<compile_context>
chip_gen: v7x
topology: tpu7x:2x2x1
jax: 0.10.0
libtpu: 0.0.40
codegen_flags: <defaults>
</compile_context>

<pallas_src>
import functools

import jax
import jax.numpy as jnp
from jax import lax
from jax.experimental import pallas as pl
from jax.experimental.pallas import tpu as pltpu


# ----------------------------------------------------------------------------
# Fused C3 kernel (channel-major: activations are (C, H*W) tiles)
# ----------------------------------------------------------------------------
def _c3_kernel(n, shortcut, c_, H, W, lpad,
               x_ref, w12_ref, s12_ref, b12_ref, *refs):
    # refs layout: n * (wm1, sm1, bm1, wm2, sm2, bm2), w3a, w3b, s3, b3,
    #              o_ref, tpad_ref(scratch)
    tpad_ref = refs[-1]
    o_ref = refs[-2]
    w3a_ref, w3b_ref, s3_ref, b3_ref = refs[-6:-2]
    m_refs = refs[:-6]

    HW = H * W

    # Zero the halo scratch once per grid step (halos stay zero afterwards).
    tpad_ref[...] = jnp.zeros_like(tpad_ref)

    x = x_ref[0]                                               # (c1, HW) bf16

    # --- cv1 | cv2 fused 1x1 conv: one matmul, K = c1 ------------------------
    y12 = jnp.dot(w12_ref[...], x, preferred_element_type=jnp.float32)
    y12 = y12 * s12_ref[...] + b12_ref[...]                    # folded BN
    y12 = y12 * jax.nn.sigmoid(y12)                            # SiLU
    b = y12[:c_, :]                                            # cv1 branch
    y2 = y12[c_:, :]                                           # cv2 branch

    # Precompute the 9 (flat shift, column mask) pairs for the 3x3 convs.
    ww = lax.broadcasted_iota(jnp.int32, (1, HW), 1) % W
    taps_meta = []
    for dy in (-1, 0, 1):
        for dx in (-1, 0, 1):
            mask = None if dx == 0 else ((ww + dx >= 0) & (ww + dx < W))
            taps_meta.append((dy * W + dx, mask))

    # --- bottleneck stack -----------------------------------------------------
    for bi in range(n):
        wm1, sm1, bm1, wm2, sm2, bm2 = m_refs[6 * bi:6 * bi + 6]

        # Bottleneck cv1: 1x1 conv
        t = jnp.dot(wm1[...], b.astype(jnp.bfloat16),
                    preferred_element_type=jnp.float32)
        t = t * sm1[...] + bm1[...]
        t = t * jax.nn.sigmoid(t)

        # Bottleneck cv2: 3x3 conv as ONE fused-K matmul over 9 shifted taps
        # read from the zero-halo scratch (vertical OOB -> halo zeros,
        # horizontal row-crossings -> column mask).
        tpad_ref[:, lpad:lpad + HW] = t
        taps = []
        for d, mask in taps_meta:
            v = tpad_ref[:, lpad + d:lpad + d + HW]            # (c_, HW)
            if mask is not None:
                v = jnp.where(mask, v, 0.0)
            taps.append(v)
        tcol = jnp.concatenate(taps, axis=0).astype(jnp.bfloat16)   # (9*c_, HW)
        u = jnp.dot(wm2[...], tcol, preferred_element_type=jnp.float32)
        u = u * sm2[...] + bm2[...]
        u = u * jax.nn.sigmoid(u)
        b = (u + b) if shortcut else u                         # residual after act

    # --- cv3 on concat([b, y2]) along channels: split matmul, no concat ------
    out = (jnp.dot(w3a_ref[...], b.astype(jnp.bfloat16),
                   preferred_element_type=jnp.float32) +
           jnp.dot(w3b_ref[...], y2.astype(jnp.bfloat16),
                   preferred_element_type=jnp.float32))
    out = out * s3_ref[...] + b3_ref[...]
    out = out * jax.nn.sigmoid(out)
    o_ref[0] = out.astype(o_ref.dtype)


def _t1x1(w):
    """(1,1,Cin,Cout) HWIO -> (Cout, Cin) channel-major matmul weight."""
    return jnp.transpose(w[0, 0], (1, 0))


def c3_forward(x_nchw, params, shortcut=True):
    """C3 forward. x_nchw: (N, c1, H, W) float32, output (N, c2, H, W)."""
    N, c1, H, Wd = x_nchw.shape
    HW = H * Wd
    c_ = params["cv1"]["w"].shape[-1]
    c2 = params["cv3"]["w"].shape[-1]
    n = len(params["m"])

    x = x_nchw.reshape(N, c1, HW).astype(jnp.bfloat16)

    def col(v):  # (C,) -> (C, 1) f32 broadcast column
        return v.astype(jnp.float32)[:, None]

    # cv1 + cv2 fused along Cout (reads x once, doubles output lane-rows).
    w12 = jnp.concatenate(
        [_t1x1(params["cv1"]["w"]), _t1x1(params["cv2"]["w"])],
        axis=0).astype(jnp.bfloat16)                            # (2c_, c1)
    s12 = jnp.concatenate([col(params["cv1"]["scale"]),
                           col(params["cv2"]["scale"])], axis=0)
    b12 = jnp.concatenate([col(params["cv1"]["bias"]),
                           col(params["cv2"]["bias"])], axis=0)

    ops = [x, w12, s12, b12]
    for bp in params["m"]:
        wm1 = _t1x1(bp["cv1"]["w"]).astype(jnp.bfloat16)        # (c_, c_)
        w33 = bp["cv2"]["w"]                                    # (3,3,c_,c_) HWIO
        # (Cout, ky, kx, Cin) -> (Cout, 9*Cin); column block k = ky*3+kx.
        wm2 = jnp.transpose(w33, (3, 0, 1, 2)).reshape(c_, 9 * c_)
        wm2 = wm2.astype(jnp.bfloat16)
        ops += [wm1, col(bp["cv1"]["scale"]), col(bp["cv1"]["bias"]),
                wm2, col(bp["cv2"]["scale"]), col(bp["cv2"]["bias"])]

    w3 = _t1x1(params["cv3"]["w"])                              # (c2, 2c_)
    ops += [w3[:, :c_].astype(jnp.bfloat16),                    # * bottleneck branch
            w3[:, c_:].astype(jnp.bfloat16),                    # * cv2 branch
            col(params["cv3"]["scale"]), col(params["cv3"]["bias"])]

    def full_spec(a):
        nd = a.ndim
        return pl.BlockSpec(a.shape, lambda i, _nd=nd: (0,) * _nd)

    in_specs = [pl.BlockSpec((1, c1, HW), lambda i: (i, 0, 0))]
    in_specs += [full_spec(a) for a in ops[1:]]

    # Zero-halo scratch for the 3x3 shifted reads (lane-aligned center store).
    lpad = ((Wd + 1 + 127) // 128) * 128

    kernel = functools.partial(_c3_kernel, n, shortcut, c_, H, Wd, lpad)

    out = pl.pallas_call(
        kernel,
        out_shape=jax.ShapeDtypeStruct((N, c2, HW), jnp.float32),
        grid_spec=pltpu.PrefetchScalarGridSpec(
            num_scalar_prefetch=0,
            grid=(N,),                      # >= 2 parallel steps for v7x 2 TCs
            in_specs=in_specs,
            out_specs=pl.BlockSpec((1, c2, HW), lambda i: (i, 0, 0)),
            scratch_shapes=[pltpu.VMEM((c_, 2 * lpad + HW), jnp.float32)],
        ),
        compiler_params=pltpu.CompilerParams(
            dimension_semantics=("parallel",),
            vmem_limit_bytes=32 * 1024 * 1024),
    )(*ops)

    return out.reshape(N, c2, H, Wd)


# ----------------------------------------------------------------------------
# Deterministic parameter construction (Conv weight + folded BN)
# ----------------------------------------------------------------------------
def init_conv_params(key, cin, cout, k):
    kw_, kg, kb, km, kv = jax.random.split(key, 5)
    w = jax.random.normal(kw_, (k, k, cin, cout), jnp.float32)
    w = w * (1.0 / jnp.sqrt(float(k * k * cin)))
    gamma = 1.0 + 0.1 * jax.random.normal(kg, (cout,), jnp.float32)
    beta = 0.1 * jax.random.normal(kb, (cout,), jnp.float32)
    mean = 0.1 * jax.random.normal(km, (cout,), jnp.float32)
    var = 1.0 + 0.1 * jnp.abs(jax.random.normal(kv, (cout,), jnp.float32))
    eps = 1e-5
    scale = gamma / jnp.sqrt(var + eps)
    bias = beta - mean * scale
    return {"w": w, "scale": scale, "bias": bias}


def init_c3_params(key, c1, c2, n=1, e=0.5):
    c_ = int(c2 * e)
    keys = jax.random.split(key, 3 + 2 * n)
    params = {
        "cv1": init_conv_params(keys[0], c1, c_, 1),
        "cv2": init_conv_params(keys[1], c1, c_, 1),
        "cv3": init_conv_params(keys[2], 2 * c_, c2, 1),
        "m": [],
    }
    for i in range(n):
        params["m"].append({
            "cv1": init_conv_params(keys[3 + 2 * i], c_, c_, 1),   # k=(1,1)
            "cv2": init_conv_params(keys[4 + 2 * i], c_, c_, 3),   # k=(3,3)
        })
    return params


# ----------------------------------------------------------------------------
# Pure-JAX reference for verification
# ----------------------------------------------------------------------------
def _ref_conv(x, w, scale, bias, residual=None):
    kh, kw = w.shape[0], w.shape[1]
    y = lax.conv_general_dilated(
        x, w, window_strides=(1, 1),
        padding=[(kh // 2, kh // 2), (kw // 2, kw // 2)],
        dimension_numbers=("NHWC", "HWIO", "NHWC"))
    y = y * scale + bias
    y = y * jax.nn.sigmoid(y)
    if residual is not None:
        y = y + residual
    return y


def c3_forward_ref(x_nchw, params, shortcut=True):
    x = jnp.transpose(x_nchw, (0, 2, 3, 1))
    y1 = _ref_conv(x, **params["cv1"])
    y2 = _ref_conv(x, **params["cv2"])
    b = y1
    for bp in params["m"]:
        t = _ref_conv(b, **bp["cv1"])
        b = _ref_conv(t, **bp["cv2"], residual=(b if shortcut else None))
    cat = jnp.concatenate([b, y2], axis=-1)
    out = _ref_conv(cat, **params["cv3"])
    return jnp.transpose(out, (0, 3, 1, 2))


# ----------------------------------------------------------------------------
if __name__ == "__main__":
    key = jax.random.PRNGKey(0)
    k_x, k_p = jax.random.split(key)

    # C3(c1=16, c2=16, n=1, shortcut=True, g=1, e=0.5)  -> c_ = 8
    c1, c2, n, shortcut = 16, 16, 1, True
    N, H, W = 2, 16, 16

    x = jax.random.normal(k_x, (N, c1, H, W), jnp.float32)   # NCHW like PyTorch
    params = init_c3_params(k_p, c1, c2, n=n, e=0.5)

    fwd = jax.jit(functools.partial(c3_forward, shortcut=shortcut))
    out = fwd(x, params)
    jax.block_until_ready(out)

    ref = c3_forward_ref(x, params, shortcut=shortcut)
    jax.block_until_ready(ref)

    assert out.shape == (N, c2, H, W), out.shape
    # bf16 MXU operands -> loosened elementwise tolerance + aggregate check.
    rel_l2 = float(jnp.linalg.norm(out - ref) / jnp.linalg.norm(ref))
    max_abs = float(jnp.max(jnp.abs(out - ref)))
    assert rel_l2 < 2e-2, (rel_l2, max_abs)
    assert jnp.allclose(out, ref, rtol=1e-1, atol=1e-1), (rel_l2, max_abs)

    print("KERNEL_OK")
</pallas_src>

<mosaic_0001>
module attributes {stable_mosaic.version = 11 : i64} {
  func.func @_c3_kernel(%arg0: i32, %arg1: memref<1x16x256xbf16, #tpu.memory_space<vmem>>, %arg2: memref<16x16xbf16, #tpu.memory_space<vmem>>, %arg3: memref<16x1xf32, #tpu.memory_space<vmem>>, %arg4: memref<16x1xf32, #tpu.memory_space<vmem>>, %arg5: memref<8x8xbf16, #tpu.memory_space<vmem>>, %arg6: memref<8x1xf32, #tpu.memory_space<vmem>>, %arg7: memref<8x1xf32, #tpu.memory_space<vmem>>, %arg8: memref<8x72xbf16, #tpu.memory_space<vmem>>, %arg9: memref<8x1xf32, #tpu.memory_space<vmem>>, %arg10: memref<8x1xf32, #tpu.memory_space<vmem>>, %arg11: memref<16x8xbf16, #tpu.memory_space<vmem>>, %arg12: memref<16x8xbf16, #tpu.memory_space<vmem>>, %arg13: memref<16x1xf32, #tpu.memory_space<vmem>>, %arg14: memref<16x1xf32, #tpu.memory_space<vmem>>, %arg15: memref<1x16x256xf32, #tpu.memory_space<vmem>>, %arg16: memref<8x512xf32, #tpu.memory_space<vmem>>) attributes {dimension_semantics = [#tpu.dimension_semantics<parallel>], iteration_bounds = array<i64: 2>, scalar_prefetch = 0 : i64, scratch_operands = 1 : i64, tpu.core_type = #tpu.core_type<tc>, window_params = [{transform_indices = @transform_0, window_bounds = array<i64: 1, 16, 256>}, {pipeline_mode = #tpu.pipeline_mode<synchronous>, transform_indices = @transform_1, window_bounds = array<i64: 16, 16>}, {pipeline_mode = #tpu.pipeline_mode<synchronous>, transform_indices = @transform_2, window_bounds = array<i64: 16, 1>}, {pipeline_mode = #tpu.pipeline_mode<synchronous>, transform_indices = @transform_3, window_bounds = array<i64: 16, 1>}, {pipeline_mode = #tpu.pipeline_mode<synchronous>, transform_indices = @transform_4, window_bounds = array<i64: 8, 8>}, {pipeline_mode = #tpu.pipeline_mode<synchronous>, transform_indices = @transform_5, window_bounds = array<i64: 8, 1>}, {pipeline_mode = #tpu.pipeline_mode<synchronous>, transform_indices = @transform_6, window_bounds = array<i64: 8, 1>}, {pipeline_mode = #tpu.pipeline_mode<synchronous>, transform_indices = @transform_7, window_bounds = array<i64: 8, 72>}, {pipeline_mode = #tpu.pipeline_mode<synchronous>, transform_indices = @transform_8, window_bounds = array<i64: 8, 1>}, {pipeline_mode = #tpu.pipeline_mode<synchronous>, transform_indices = @transform_9, window_bounds = array<i64: 8, 1>}, {pipeline_mode = #tpu.pipeline_mode<synchronous>, transform_indices = @transform_10, window_bounds = array<i64: 16, 8>}, {pipeline_mode = #tpu.pipeline_mode<synchronous>, transform_indices = @transform_11, window_bounds = array<i64: 16, 8>}, {pipeline_mode = #tpu.pipeline_mode<synchronous>, transform_indices = @transform_12, window_bounds = array<i64: 16, 1>}, {pipeline_mode = #tpu.pipeline_mode<synchronous>, transform_indices = @transform_13, window_bounds = array<i64: 16, 1>}, {transform_indices = @transform_14, window_bounds = array<i64: 1, 16, 256>}]} {
    %cst = arith.constant 0.000000e+00 : f32
    %0 = vector.broadcast %cst : f32 to vector<8x512xf32>
    %c0 = arith.constant 0 : index
    %c0_0 = arith.constant 0 : index
    %1 = vector.load %arg16[%c0, %c0_0] : memref<8x512xf32, #tpu.memory_space<vmem>>, vector<8x512xf32>
    tpu.vector_store %arg16[%c0, %c0_0], %0 {strides = array<i32>} : memref<8x512xf32, #tpu.memory_space<vmem>>, vector<8x512xf32>,
    %c0_1 = arith.constant 0 : index
    %c0_2 = arith.constant 0 : index
    %c0_3 = arith.constant 0 : index
    %2 = vector.load %arg1[%c0_1, %c0_2, %c0_3] : memref<1x16x256xbf16, #tpu.memory_space<vmem>>, vector<1x16x256xbf16>
    %3 = vector.shape_cast %2 : vector<1x16x256xbf16> to vector<16x256xbf16>
    %c0_4 = arith.constant 0 : index
    %c0_5 = arith.constant 0 : index
    %4 = vector.load %arg2[%c0_4, %c0_5] : memref<16x16xbf16, #tpu.memory_space<vmem>>, vector<16x16xbf16>
    %cst_6 = arith.constant dense<0.000000e+00> : vector<16x256xf32>
    %5 = tpu.matmul %4, %3, %cst_6 {dimension_numbers = #tpu.dot_dimension_numbers<[1], [0], [0], [1], [0, 0, 1, 1], [], []>} : vector<16x16xbf16>, vector<16x256xbf16>, vector<16x256xf32> -> vector<16x256xf32>
    %c0_7 = arith.constant 0 : index
    %c0_8 = arith.constant 0 : index
    %6 = vector.load %arg3[%c0_7, %c0_8] : memref<16x1xf32, #tpu.memory_space<vmem>>, vector<16x1xf32>
    %7 = vector.broadcast %6 : vector<16x1xf32> to vector<16x256xf32>
    %8 = arith.mulf %5, %7 : vector<16x256xf32>
    %c0_9 = arith.constant 0 : index
    %c0_10 = arith.constant 0 : index
    %9 = vector.load %arg4[%c0_9, %c0_10] : memref<16x1xf32, #tpu.memory_space<vmem>>, vector<16x1xf32>
    %10 = vector.broadcast %9 : vector<16x1xf32> to vector<16x256xf32>
    %11 = arith.addf %8, %10 : vector<16x256xf32>
    %12 = arith.negf %11 : vector<16x256xf32>
    %13 = math.exp %12 : vector<16x256xf32>
    %cst_11 = arith.constant 1.000000e+00 : f32
    %14 = vector.broadcast %cst_11 : f32 to vector<16x256xf32>
    %15 = arith.addf %14, %13 : vector<16x256xf32>
    %16 = arith.divf %14, %15 : vector<16x256xf32>
    %17 = arith.mulf %11, %16 : vector<16x256xf32>
    %18 = vector.extract_strided_slice %17 {offsets = [0, 0], sizes = [8, 256], strides = [1, 1]} : vector<16x256xf32> to vector<8x256xf32>
    %19 = vector.extract_strided_slice %17 {offsets = [8, 0], sizes = [8, 256], strides = [1, 1]} : vector<16x256xf32> to vector<8x256xf32>
    %20 = tpu.iota {dimensions = array<i32: 1>} : vector<1x256xi32>
    %c16_i32 = arith.constant 16 : i32
    %c0_i32 = arith.constant 0 : i32
    %21 = arith.cmpi eq, %c16_i32, %c0_i32 : i32
    %c1_i32 = arith.constant 1 : i32
    %22 = arith.select %21, %c1_i32, %c16_i32 : i32
    %23 = vector.broadcast %22 : i32 to vector<1x256xi32>
    %24 = arith.remsi %20, %23 : vector<1x256xi32>
    %c0_i32_12 = arith.constant 0 : i32
    %25 = vector.broadcast %c0_i32_12 : i32 to vector<1x256xi32>
    %26 = arith.cmpi ne, %24, %25 : vector<1x256xi32>
    %c0_i32_13 = arith.constant 0 : i32
    %27 = vector.broadcast %c0_i32_13 : i32 to vector<1x256xi32>
    %28 = arith.cmpi slt, %24, %27 : vector<1x256xi32>
    %c0_i32_14 = arith.constant 0 : i32
    %29 = arith.cmpi slt, %22, %c0_i32_14 : i32
    %30 = vector.broadcast %29 : i1 to vector<1x256xi1>
    %31 = vector.broadcast %30 : vector<1x256xi1> to vector<1x256xi1>
    %32 = arith.xori %28, %31 : vector<1x256xi1>
    %33 = arith.andi %32, %26 : vector<1x256xi1>
    %34 = vector.broadcast %22 : i32 to vector<1x256xi32>
    %35 = arith.addi %24, %34 : vector<1x256xi32>
    %36 = arith.select %33, %35, %24 : vector<1x256xi1>, vector<1x256xi32>
    %c-1_i32 = arith.constant -1 : i32
    %37 = vector.broadcast %c-1_i32 : i32 to vector<1x256xi32>
    %38 = arith.addi %36, %37 : vector<1x256xi32>
    %c0_i32_15 = arith.constant 0 : i32
    %39 = vector.broadcast %c0_i32_15 : i32 to vector<1x256xi32>
    %40 = arith.cmpi sge, %38, %39 : vector<1x256xi32>
    %c-1_i32_16 = arith.constant -1 : i32
    %41 = vector.broadcast %c-1_i32_16 : i32 to vector<1x256xi32>
    %42 = arith.addi %36, %41 : vector<1x256xi32>
    %c16_i32_17 = arith.constant 16 : i32
    %43 = vector.broadcast %c16_i32_17 : i32 to vector<1x256xi32>
    %44 = arith.cmpi slt, %42, %43 : vector<1x256xi32>
    %45 = arith.andi %40, %44 : vector<1x256xi1>
    %c1_i32_18 = arith.constant 1 : i32
    %46 = vector.broadcast %c1_i32_18 : i32 to vector<1x256xi32>
    %47 = arith.addi %36, %46 : vector<1x256xi32>
    %c0_i32_19 = arith.constant 0 : i32
    %48 = vector.broadcast %c0_i32_19 : i32 to vector<1x256xi32>
    %49 = arith.cmpi sge, %47, %48 : vector<1x256xi32>
    %c1_i32_20 = arith.constant 1 : i32
    %50 = vector.broadcast %c1_i32_20 : i32 to vector<1x256xi32>
    %51 = arith.addi %36, %50 : vector<1x256xi32>
    %c16_i32_21 = arith.constant 16 : i32
    %52 = vector.broadcast %c16_i32_21 : i32 to vector<1x256xi32>
    %53 = arith.cmpi slt, %51, %52 : vector<1x256xi32>
    %54 = arith.andi %49, %53 : vector<1x256xi1>
    %c-1_i32_22 = arith.constant -1 : i32
    %55 = vector.broadcast %c-1_i32_22 : i32 to vector<1x256xi32>
    %56 = arith.addi %36, %55 : vector<1x256xi32>
    %c0_i32_23 = arith.constant 0 : i32
    %57 = vector.broadcast %c0_i32_23 : i32 to vector<1x256xi32>
    %58 = arith.cmpi sge, %56, %57 : vector<1x256xi32>
    %c-1_i32_24 = arith.constant -1 : i32
    %59 = vector.broadcast %c-1_i32_24 : i32 to vector<1x256xi32>
    %60 = arith.addi %36, %59 : vector<1x256xi32>
    %c16_i32_25 = arith.constant 16 : i32
    %61 = vector.broadcast %c16_i32_25 : i32 to vector<1x256xi32>
    %62 = arith.cmpi slt, %60, %61 : vector<1x256xi32>
    %63 = arith.andi %58, %62 : vector<1x256xi1>
    %c1_i32_26 = arith.constant 1 : i32
    %64 = vector.broadcast %c1_i32_26 : i32 to vector<1x256xi32>
    %65 = arith.addi %36, %64 : vector<1x256xi32>
    %c0_i32_27 = arith.constant 0 : i32
    %66 = vector.broadcast %c0_i32_27 : i32 to vector<1x256xi32>
    %67 = arith.cmpi sge, %65, %66 : vector<1x256xi32>
    %c1_i32_28 = arith.constant 1 : i32
    %68 = vector.broadcast %c1_i32_28 : i32 to vector<1x256xi32>
    %69 = arith.addi %36, %68 : vector<1x256xi32>
    %c16_i32_29 = arith.constant 16 : i32
    %70 = vector.broadcast %c16_i32_29 : i32 to vector<1x256xi32>
    %71 = arith.cmpi slt, %69, %70 : vector<1x256xi32>
    %72 = arith.andi %67, %71 : vector<1x256xi1>
    %c-1_i32_30 = arith.constant -1 : i32
    %73 = vector.broadcast %c-1_i32_30 : i32 to vector<1x256xi32>
    %74 = arith.addi %36, %73 : vector<1x256xi32>
    %c0_i32_31 = arith.constant 0 : i32
    %75 = vector.broadcast %c0_i32_31 : i32 to vector<1x256xi32>
    %76 = arith.cmpi sge, %74, %75 : vector<1x256xi32>
    %c-1_i32_32 = arith.constant -1 : i32
    %77 = vector.broadcast %c-1_i32_32 : i32 to vector<1x256xi32>
    %78 = arith.addi %36, %77 : vector<1x256xi32>
    %c16_i32_33 = arith.constant 16 : i32
    %79 = vector.broadcast %c16_i32_33 : i32 to vector<1x256xi32>
    %80 = arith.cmpi slt, %78, %79 : vector<1x256xi32>
    %81 = arith.andi %76, %80 : vector<1x256xi1>
    %c1_i32_34 = arith.constant 1 : i32
    %82 = vector.broadcast %c1_i32_34 : i32 to vector<1x256xi32>
    %83 = arith.addi %36, %82 : vector<1x256xi32>
    %c0_i32_35 = arith.constant 0 : i32
    %84 = vector.broadcast %c0_i32_35 : i32 to vector<1x256xi32>
    %85 = arith.cmpi sge, %83, %84 : vector<1x256xi32>
    %c1_i32_36 = arith.constant 1 : i32
    %86 = vector.broadcast %c1_i32_36 : i32 to vector<1x256xi32>
    %87 = arith.addi %36, %86 : vector<1x256xi32>
    %c16_i32_37 = arith.constant 16 : i32
    %88 = vector.broadcast %c16_i32_37 : i32 to vector<1x256xi32>
    %89 = arith.cmpi slt, %87, %88 : vector<1x256xi32>
    %90 = arith.andi %85, %89 : vector<1x256xi1>
    %c0_38 = arith.constant 0 : index
    %c0_39 = arith.constant 0 : index
    %91 = vector.load %arg5[%c0_38, %c0_39] : memref<8x8xbf16, #tpu.memory_space<vmem>>, vector<8x8xbf16>
    %92 = arith.truncf %18 : vector<8x256xf32> to vector<8x256xbf16>
    %cst_40 = arith.constant dense<0.000000e+00> : vector<8x256xf32>
    %93 = tpu.matmul %91, %92, %cst_40 {dimension_numbers = #tpu.dot_dimension_numbers<[1], [0], [0], [1], [0, 0, 1, 1], [], []>} : vector<8x8xbf16>, vector<8x256xbf16>, vector<8x256xf32> -> vector<8x256xf32>
    %c0_41 = arith.constant 0 : index
    %c0_42 = arith.constant 0 : index
    %94 = vector.load %arg6[%c0_41, %c0_42] : memref<8x1xf32, #tpu.memory_space<vmem>>, vector<8x1xf32>
    %95 = vector.broadcast %94 : vector<8x1xf32> to vector<8x256xf32>
    %96 = arith.mulf %93, %95 : vector<8x256xf32>
    %c0_43 = arith.constant 0 : index
    %c0_44 = arith.constant 0 : index
    %97 = vector.load %arg7[%c0_43, %c0_44] : memref<8x1xf32, #tpu.memory_space<vmem>>, vector<8x1xf32>
    %98 = vector.broadcast %97 : vector<8x1xf32> to vector<8x256xf32>
    %99 = arith.addf %96, %98 : vector<8x256xf32>
    %100 = arith.negf %99 : vector<8x256xf32>
    %101 = math.exp %100 : vector<8x256xf32>
    %cst_45 = arith.constant 1.000000e+00 : f32
    %102 = vector.broadcast %cst_45 : f32 to vector<8x256xf32>
    %103 = arith.addf %102, %101 : vector<8x256xf32>
    %104 = arith.divf %102, %103 : vector<8x256xf32>
    %105 = arith.mulf %99, %104 : vector<8x256xf32>
    %c0_46 = arith.constant 0 : index
    %c128 = arith.constant 128 : index
    %106 = vector.load %arg16[%c0_46, %c128] : memref<8x512xf32, #tpu.memory_space<vmem>>, vector<8x256xf32>
    tpu.vector_store %arg16[%c0_46, %c128], %105 {strides = array<i32>} : memref<8x512xf32, #tpu.memory_space<vmem>>, vector<8x256xf32>,
    %c0_47 = arith.constant 0 : index
    %c111 = arith.constant 111 : index
    %107 = vector.load %arg16[%c0_47, %c111] : memref<8x512xf32, #tpu.memory_space<vmem>>, vector<8x256xf32>
    %cst_48 = arith.constant 0.000000e+00 : f32
    %108 = vector.shape_cast %45 : vector<1x256xi1> to vector<1x256xi1>
    %109 = vector.broadcast %108 : vector<1x256xi1> to vector<8x256xi1>
    %110 = vector.broadcast %cst_48 : f32 to vector<8x256xf32>
    %111 = arith.select %109, %107, %110 : vector<8x256xi1>, vector<8x256xf32>
    %c0_49 = arith.constant 0 : index
    %c112 = arith.constant 112 : index
    %112 = vector.load %arg16[%c0_49, %c112] : memref<8x512xf32, #tpu.memory_space<vmem>>, vector<8x256xf32>
    %c0_50 = arith.constant 0 : index
    %c113 = arith.constant 113 : index
    %113 = vector.load %arg16[%c0_50, %c113] : memref<8x512xf32, #tpu.memory_space<vmem>>, vector<8x256xf32>
    %cst_51 = arith.constant 0.000000e+00 : f32
    %114 = vector.shape_cast %54 : vector<1x256xi1> to vector<1x256xi1>
    %115 = vector.broadcast %114 : vector<1x256xi1> to vector<8x256xi1>
    %116 = vector.broadcast %cst_51 : f32 to vector<8x256xf32>
    %117 = arith.select %115, %113, %116 : vector<8x256xi1>, vector<8x256xf32>
    %c0_52 = arith.constant 0 : index
    %c127 = arith.constant 127 : index
    %118 = vector.load %arg16[%c0_52, %c127] : memref<8x512xf32, #tpu.memory_space<vmem>>, vector<8x256xf32>
    %cst_53 = arith.constant 0.000000e+00 : f32
    %119 = vector.shape_cast %63 : vector<1x256xi1> to vector<1x256xi1>
    %120 = vector.broadcast %119 : vector<1x256xi1> to vector<8x256xi1>
    %121 = vector.broadcast %cst_53 : f32 to vector<8x256xf32>
    %122 = arith.select %120, %118, %121 : vector<8x256xi1>, vector<8x256xf32>
    %c0_54 = arith.constant 0 : index
    %c128_55 = arith.constant 128 : index
    %123 = vector.load %arg16[%c0_54, %c128_55] : memref<8x512xf32, #tpu.memory_space<vmem>>, vector<8x256xf32>
    %c0_56 = arith.constant 0 : index
    %c129 = arith.constant 129 : index
    %124 = vector.load %arg16[%c0_56, %c129] : memref<8x512xf32, #tpu.memory_space<vmem>>, vector<8x256xf32>
    %cst_57 = arith.constant 0.000000e+00 : f32
    %125 = vector.shape_cast %72 : vector<1x256xi1> to vector<1x256xi1>
    %126 = vector.broadcast %125 : vector<1x256xi1> to vector<8x256xi1>
    %127 = vector.broadcast %cst_57 : f32 to vector<8x256xf32>
    %128 = arith.select %126, %124, %127 : vector<8x256xi1>, vector<8x256xf32>
    %c0_58 = arith.constant 0 : index
    %c143 = arith.constant 143 : index
    %129 = vector.load %arg16[%c0_58, %c143] : memref<8x512xf32, #tpu.memory_space<vmem>>, vector<8x256xf32>
    %cst_59 = arith.constant 0.000000e+00 : f32
    %130 = vector.shape_cast %81 : vector<1x256xi1> to vector<1x256xi1>
    %131 = vector.broadcast %130 : vector<1x256xi1> to vector<8x256xi1>
    %132 = vector.broadcast %cst_59 : f32 to vector<8x256xf32>
    %133 = arith.select %131, %129, %132 : vector<8x256xi1>, vector<8x256xf32>
    %c0_60 = arith.constant 0 : index
    %c144 = arith.constant 144 : index
    %134 = vector.load %arg16[%c0_60, %c144] : memref<8x512xf32, #tpu.memory_space<vmem>>, vector<8x256xf32>
    %c0_61 = arith.constant 0 : index
    %c145 = arith.constant 145 : index
    %135 = vector.load %arg16[%c0_61, %c145] : memref<8x512xf32, #tpu.memory_space<vmem>>, vector<8x256xf32>
    %cst_62 = arith.constant 0.000000e+00 : f32
    %136 = vector.shape_cast %90 : vector<1x256xi1> to vector<1x256xi1>
    %137 = vector.broadcast %136 : vector<1x256xi1> to vector<8x256xi1>
    %138 = vector.broadcast %cst_62 : f32 to vector<8x256xf32>
    %139 = arith.select %137, %135, %138 : vector<8x256xi1>, vector<8x256xf32>
    %140 = tpu.concatenate %111, %112, %117, %122, %123, %128, %133, %134, %139 in 0 : vector<8x256xf32>, vector<8x256xf32>, vector<8x256xf32>, vector<8x256xf32>, vector<8x256xf32>, vector<8x256xf32>, vector<8x256xf32>, vector<8x256xf32>, vector<8x256xf32> -> vector<72x256xf32>
    %141 = arith.truncf %140 : vector<72x256xf32> to vector<72x256xbf16>
    %c0_63 = arith.constant 0 : index
    %c0_64 = arith.constant 0 : index
    %142 = vector.load %arg8[%c0_63, %c0_64] : memref<8x72xbf16, #tpu.memory_space<vmem>>, vector<8x72xbf16>
    %cst_65 = arith.constant dense<0.000000e+00> : vector<8x256xf32>
    %143 = tpu.matmul %142, %141, %cst_65 {dimension_numbers = #tpu.dot_dimension_numbers<[1], [0], [0], [1], [0, 0, 1, 1], [], []>} : vector<8x72xbf16>, vector<72x256xbf16>, vector<8x256xf32> -> vector<8x256xf32>
    %c0_66 = arith.constant 0 : index
    %c0_67 = arith.constant 0 : index
    %144 = vector.load %arg9[%c0_66, %c0_67] : memref<8x1xf32, #tpu.memory_space<vmem>>, vector<8x1xf32>
    %145 = vector.broadcast %144 : vector<8x1xf32> to vector<8x256xf32>
    %146 = arith.mulf %143, %145 : vector<8x256xf32>
    %c0_68 = arith.constant 0 : index
    %c0_69 = arith.constant 0 : index
    %147 = vector.load %arg10[%c0_68, %c0_69] : memref<8x1xf32, #tpu.memory_space<vmem>>, vector<8x1xf32>
    %148 = vector.broadcast %147 : vector<8x1xf32> to vector<8x256xf32>
    %149 = arith.addf %146, %148 : vector<8x256xf32>
    %150 = arith.negf %149 : vector<8x256xf32>
    %151 = math.exp %150 : vector<8x256xf32>
    %cst_70 = arith.constant 1.000000e+00 : f32
    %152 = vector.broadcast %cst_70 : f32 to vector<8x256xf32>
    %153 = arith.addf %152, %151 : vector<8x256xf32>
    %154 = arith.divf %152, %153 : vector<8x256xf32>
    %155 = arith.mulf %149, %154 : vector<8x256xf32>
    %156 = arith.addf %155, %18 : vector<8x256xf32>
    %c0_71 = arith.constant 0 : index
    %c0_72 = arith.constant 0 : index
    %157 = vector.load %arg11[%c0_71, %c0_72] : memref<16x8xbf16, #tpu.memory_space<vmem>>, vector<16x8xbf16>
    %158 = arith.truncf %156 : vector<8x256xf32> to vector<8x256xbf16>
    %cst_73 = arith.constant dense<0.000000e+00> : vector<16x256xf32>
    %159 = tpu.matmul %157, %158, %cst_73 {dimension_numbers = #tpu.dot_dimension_numbers<[1], [0], [0], [1], [0, 0, 1, 1], [], []>} : vector<16x8xbf16>, vector<8x256xbf16>, vector<16x256xf32> -> vector<16x256xf32>
    %c0_74 = arith.constant 0 : index
    %c0_75 = arith.constant 0 : index
    %160 = vector.load %arg12[%c0_74, %c0_75] : memref<16x8xbf16, #tpu.memory_space<vmem>>, vector<16x8xbf16>
    %161 = arith.truncf %19 : vector<8x256xf32> to vector<8x256xbf16>
    %cst_76 = arith.constant dense<0.000000e+00> : vector<16x256xf32>
    %162 = tpu.matmul %160, %161, %cst_76 {dimension_numbers = #tpu.dot_dimension_numbers<[1], [0], [0], [1], [0, 0, 1, 1], [], []>} : vector<16x8xbf16>, vector<8x256xbf16>, vector<16x256xf32> -> vector<16x256xf32>
    %163 = arith.addf %159, %162 : vector<16x256xf32>
    %c0_77 = arith.constant 0 : index
    %c0_78 = arith.constant 0 : index
    %164 = vector.load %arg13[%c0_77, %c0_78] : memref<16x1xf32, #tpu.memory_space<vmem>>, vector<16x1xf32>
    %165 = vector.broadcast %164 : vector<16x1xf32> to vector<16x256xf32>
    %166 = arith.mulf %163, %165 : vector<16x256xf32>
    %c0_79 = arith.constant 0 : index
    %c0_80 = arith.constant 0 : index
    %167 = vector.load %arg14[%c0_79, %c0_80] : memref<16x1xf32, #tpu.memory_space<vmem>>, vector<16x1xf32>
    %168 = vector.broadcast %167 : vector<16x1xf32> to vector<16x256xf32>
    %169 = arith.addf %166, %168 : vector<16x256xf32>
    %170 = arith.negf %169 : vector<16x256xf32>
    %171 = math.exp %170 : vector<16x256xf32>
    %cst_81 = arith.constant 1.000000e+00 : f32
    %172 = vector.broadcast %cst_81 : f32 to vector<16x256xf32>
    %173 = arith.addf %172, %171 : vector<16x256xf32>
    %174 = arith.divf %172, %173 : vector<16x256xf32>
    %175 = arith.mulf %169, %174 : vector<16x256xf32>
    %c0_82 = arith.constant 0 : index
    %c0_83 = arith.constant 0 : index
    %c0_84 = arith.constant 0 : index
    %176 = vector.load %arg15[%c0_82, %c0_83, %c0_84] : memref<1x16x256xf32, #tpu.memory_space<vmem>>, vector<1x16x256xf32>
    %177 = vector.shape_cast %176 : vector<1x16x256xf32> to vector<16x256xf32>
    %178 = vector.shape_cast %175 : vector<16x256xf32> to vector<1x16x256xf32>
    tpu.vector_store %arg15[%c0_82, %c0_83, %c0_84], %178 {strides = array<i32>} : memref<1x16x256xf32, #tpu.memory_space<vmem>>, vector<1x16x256xf32>,
    return
  }
  func.func @transform_0(%arg0: i32) -> (i32, i32, i32) {
    %c0_i32 = arith.constant 0 : i32
    %c0_i32_0 = arith.constant 0 : i32
    %c0_i32_1 = arith.constant 0 : i32
    return %arg0, %c0_i32, %c0_i32_0 : i32, i32, i32
  }
  func.func @transform_1(%arg0: i32) -> (i32, i32) {
    %c0_i32 = arith.constant 0 : i32
    %c0_i32_0 = arith.constant 0 : i32
    %c0_i32_1 = arith.constant 0 : i32
    return %c0_i32, %c0_i32_0 : i32, i32
  }
  func.func @transform_2(%arg0: i32) -> (i32, i32) {
    %c0_i32 = arith.constant 0 : i32
    %c0_i32_0 = arith.constant 0 : i32
    %c0_i32_1 = arith.constant 0 : i32
    return %c0_i32, %c0_i32_0 : i32, i32
  }
  func.func @transform_3(%arg0: i32) -> (i32, i32) {
    %c0_i32 = arith.constant 0 : i32
    %c0_i32_0 = arith.constant 0 : i32
    %c0_i32_1 = arith.constant 0 : i32
    return %c0_i32, %c0_i32_0 : i32, i32
  }
  func.func @transform_4(%arg0: i32) -> (i32, i32) {
    %c0_i32 = arith.constant 0 : i32
    %c0_i32_0 = arith.constant 0 : i32
    %c0_i32_1 = arith.constant 0 : i32
    return %c0_i32, %c0_i32_0 : i32, i32
  }
  func.func @transform_5(%arg0: i32) -> (i32, i32) {
    %c0_i32 = arith.constant 0 : i32
    %c0_i32_0 = arith.constant 0 : i32
    %c0_i32_1 = arith.constant 0 : i32
    return %c0_i32, %c0_i32_0 : i32, i32
  }
  func.func @transform_6(%arg0: i32) -> (i32, i32) {
    %c0_i32 = arith.constant 0 : i32
    %c0_i32_0 = arith.constant 0 : i32
    %c0_i32_1 = arith.constant 0 : i32
    return %c0_i32, %c0_i32_0 : i32, i32
  }
  func.func @transform_7(%arg0: i32) -> (i32, i32) {
    %c0_i32 = arith.constant 0 : i32
    %c0_i32_0 = arith.constant 0 : i32
    %c0_i32_1 = arith.constant 0 : i32
    return %c0_i32, %c0_i32_0 : i32, i32
  }
  func.func @transform_8(%arg0: i32) -> (i32, i32) {
    %c0_i32 = arith.constant 0 : i32
    %c0_i32_0 = arith.constant 0 : i32
    %c0_i32_1 = arith.constant 0 : i32
    return %c0_i32, %c0_i32_0 : i32, i32
  }
  func.func @transform_9(%arg0: i32) -> (i32, i32) {
    %c0_i32 = arith.constant 0 : i32
    %c0_i32_0 = arith.constant 0 : i32
    %c0_i32_1 = arith.constant 0 : i32
    return %c0_i32, %c0_i32_0 : i32, i32
  }
  func.func @transform_10(%arg0: i32) -> (i32, i32) {
    %c0_i32 = arith.constant 0 : i32
    %c0_i32_0 = arith.constant 0 : i32
    %c0_i32_1 = arith.constant 0 : i32
    return %c0_i32, %c0_i32_0 : i32, i32
  }
  func.func @transform_11(%arg0: i32) -> (i32, i32) {
    %c0_i32 = arith.constant 0 : i32
    %c0_i32_0 = arith.constant 0 : i32
    %c0_i32_1 = arith.constant 0 : i32
    return %c0_i32, %c0_i32_0 : i32, i32
  }
  func.func @transform_12(%arg0: i32) -> (i32, i32) {
    %c0_i32 = arith.constant 0 : i32
    %c0_i32_0 = arith.constant 0 : i32
    %c0_i32_1 = arith.constant 0 : i32
    return %c0_i32, %c0_i32_0 : i32, i32
  }
  func.func @transform_13(%arg0: i32) -> (i32, i32) {
    %c0_i32 = arith.constant 0 : i32
    %c0_i32_0 = arith.constant 0 : i32
    %c0_i32_1 = arith.constant 0 : i32
    return %c0_i32, %c0_i32_0 : i32, i32
  }
  func.func @transform_14(%arg0: i32) -> (i32, i32, i32) {
    %c0_i32 = arith.constant 0 : i32
    %c0_i32_0 = arith.constant 0 : i32
    %c0_i32_1 = arith.constant 0 : i32
    return %arg0, %c0_i32, %c0_i32_0 : i32, i32, i32
  }
}

</mosaic_0001>

<bundles_post_ra>
// kernel: c3_forward.1
= control target key start
LH: loop header
LB: loop body
LE: loop exit
PB: predicated region body
PF: predicated region fallthrough
CT: control target
= control target key end

     0   :  { %s1459_s29 = smov 0   ;;  %s1639_s0 = inlined_call_operand.vmem [shape: bf16[2,16,256], index: 0, kind: input, shape index: {}]   ;;  %s1640_s1 = inlined_call_operand.vmem [shape: bf16[16,16], index: 1, kind: input, shape index: {}]   ;;  %s1641_s2 = inlined_call_operand.vmem [shape: f32[16,1], index: 2, kind: input, shape index: {}]   ;;  %s1642_s3 = inlined_call_operand.vmem [shape: f32[16,1], index: 3, kind: input, shape index: {}]   ;;  %s1643_s4 = inlined_call_operand.vmem [shape: bf16[8,8], index: 4, kind: input, shape index: {}]   ;;  %s1644_s5 = inlined_call_operand.vmem [shape: f32[8,1], index: 5, kind: input, shape index: {}]   ;;  %s1645_s6 = inlined_call_operand.vmem [shape: f32[8,1], index: 6, kind: input, shape index: {}]   ;;  %s1646_s7 = inlined_call_operand.vmem [shape: bf16[8,72], index: 7, kind: input, shape index: {}]   ;;  %s1647_s8 = inlined_call_operand.vmem [shape: f32[8,1], index: 8, kind: input, shape index: {}]   ;;  %s1648_s9 = inlined_call_operand.vmem [shape: f32[8,1], index: 9, kind: input, shape index: {}]   ;;  %s1649_s10 = inlined_call_operand.vmem [shape: bf16[16,8], index: 10, kind: input, shape index: {}]   ;;  %s1650_s11 = inlined_call_operand.vmem [shape: bf16[16,8], index: 11, kind: input, shape index: {}]   ;;  %s1651_s12 = inlined_call_operand.vmem [shape: f32[16,1], index: 12, kind: input, shape index: {}]   ;;  %s1652_s13 = inlined_call_operand.vmem [shape: f32[16,1], index: 13, kind: input, shape index: {}]   ;;  %s1653_s14 = inlined_call_operand.vmem [shape: f32[2,16,256], index: 14, kind: output, shape index: {}]  }
   0x1 LB: > { %s1183_s30 = sadd.s32 4294967295, %s1371_s29   ;;  %p1187_p0 = scmp.ge.s32.totalorder %s1371_s29, 1  ;;  %s1371_s29 = sphi %s1459_s29, %s24_s29  }
   0x2   : > { %p412_p1 = scmp.lt.s32.totalorder %s1371_s29, 3 }
   0x4   : > { %p413_p2 = pnand %p1187_p0, %p412_p1 }
   0x5   : > { %p458_p3 = scmp.lt.s32.totalorder (!%p413_p2), %s1183_s30, 1  ;;  %v1373_v0 = vmov (!%p413_p2), 0   ;;  %v539_v1 = vld [vmem:[%s1641_s2] sm:$0xff] (!%p413_p2)  ;;  %vm492_vm0 = vcmask (!%p413_p2), 130048   ;;  %vm649_vm1 = vcmask (!%p413_p2), 1043456   ;;  %vm645_vm2 = vcmask (!%p413_p2), 64512  }
   0x6   : > { %416 = sbr.rel (%p413_p2) target bundleno = 1162 (0x48a), region = 76  ;;  %528 = vmatprep.mubr.bf16.mxu0 (!%p413_p2), %v1373_v0  ;;  %1269 = vset.pattern.permute.xlu0 (!%p413_p2), %v1373_v0  ;;  %v555_v2 = vld [vmem:[%s1642_s3] sm:$0xff] (!%p413_p2)  ;;  %v1374_v32 = vmov (!%p413_p2), 0.0   ;;  %s1375_s17 = smov (!%p413_p2), 16   ;;  %v556_v55 = vld [vmem:[%s1642_s3 + $0x8] sm:$0xff] (!%p413_p2)  ;;  %v599_v63 = vlaneseq (!%p413_p2)  ;;  %vm745_vm3 = vcmask (!%p413_p2), 138240  }
   0x7   : > { %543 = vperm.xlu0 (!%p413_p2), %1269, %v539_v1   ;;  %688 = vmatprep.mubr.bf16.mxu1 (!%p413_p2), %v1373_v0  ;;  %v1314_v5 = vld [vmem:[%s1640_s1] sm:$0xff] (!%p413_p2)   ;;  %s1376_s18 = smov (!%p413_p2), 17   ;;  %s1378_s20 = smov (!%p413_p2), 15   ;;  %v540_v56 = vld [vmem:[%s1641_s2 + $0x8] sm:$0xff] (!%p413_p2)  ;;  %vm775_vm6 = vcmask (!%p413_p2), 7168   ;;  %vm762_vm7 = vcmask (!%p413_p2), 121856  }
   0x8   : > { %1270 = vset.pattern.permute.xlu1 (!%p413_p2), %v1373_v0  ;;  %v697_v6 = vld [vmem:[%s1644_s5] sm:$0xff] (!%p413_p2)  ;;  %s1379_s21 = smov (!%p413_p2), 113   ;;  %s1381_s23 = smov (!%p413_p2), 112   ;;  %v1065_v59 = vld [vmem:[%s1651_s12 + $0x8] sm:$0xff] (!%p413_p2)  ;;  %v600_v1 = vand.u32 (!%p413_p2), 127, %v599_v63  ;;  %vm1383_vm8 = vmmov (!%p413_p2), 1  }
   0x9   : > { %700 = vperm.xlu1 (!%p413_p2), %1270, %v697_v6   ;;  %v705_v7 = vld [vmem:[%s1645_s6] sm:$0xff] (!%p413_p2)  ;;  %s1382_s24 = smov (!%p413_p2), 111   ;;  %v1081_v61 = vld [vmem:[%s1652_s13 + $0x8] sm:$0xff] (!%p413_p2)  ;;  %vm794_vm14 = vcmask (!%p413_p2), 1039360  }
   0xa   : > { %v642_v31 = vld [vmem:[%s1643_s4] sm:$0xf] (!%p413_p2) }
   0xb   : > { %559 = vperm.xlu0 (!%p413_p2), %1269, %v555_v2   ;;  %v918_v57 = vld [vmem:[%s1648_s9] sm:$0xff] (!%p413_p2) }
   0xc   : > { %v910_v58 = vld [vmem:[%s1647_s8] sm:$0xff] (!%p413_p2) }
   0xd   : > { %s1659_s30 = smov (!%p458_p3, %s1183_s30), 1  ;;  %708 = vperm.xlu1 %1270, %v705_v7   ;;  %v1064_v60 = vld [vmem:[%s1651_s12] sm:$0xff] }
   0xe   : > { %s1244_s19 = sshll.u32 %s1659_s30, 4  ;;  %v1080_v62 = vld [vmem:[%s1652_s13] sm:$0xff] }
   0xf   : > { %s462_s22 = scalar_lea.vmem %s1639_s0, %s1244_s19  ;;  %739 = vrot.lane.b32.xlu0 %v1374_v32, %s1376_s18  ;;  %s1377_s19 = smov 1  }
  0x10   : > { %v1311_v3 = vld [vmem:[%s462_s22 + $0x4] ss:$8 sps:$4 sm:$0xff]   ;;  %v1313_v4 = vld [vmem:[%s462_s22] ss:$8 sps:$4 sm:$0xff]   ;;  %s1380_s22 = smov 127  }
  0x11   : > { %496 = vmatprep.subr.bf16.mxu0 %v1311_v3  ;;  %827 = vrot.lane.b32.xlu1 %v1374_v32, %s1375_s17 }
  0x12   : > { %497 = vmatpush1.bf16.msra.mxu0 %v1313_v4  ;;  %v601_v4 = vadd.s32 128, %v600_v1 }
  0x13   : > { %756 = vrot.lane.b32.xlu0 %v1374_v32, %s1378_s20 }
  0x14   : > { %v613_v7 = vand.u32 15, %v601_v4 }
  0x15   : > { %1195 = vmatmul.mubr.msk.bf16.vlgmr.msra.gmra.mrb[0].mxu0 %vm492_vm0, %v1314_v5  ;;  %769 = vrot.lane.b32.xlu1 %v1374_v32, %s1377_s19 }
  0x16   : > { %901 = vmatprep.mubr.bf16.mxu0 %v1373_v0 }
  0x86   : > { %v544_v8 = vpop.permute.xlu0 %543 }
  0x88   : > { %v701_v33 = vpop.permute.xlu1 %700 }
  0x8a   : > { %v560_v12 = vpop.permute.xlu0 %559 }
  0x8c   : > { %v709_v37 = vpop.permute.xlu1 %708 }
  0x8e   : > { %v740_v3 = vpop.permute.xlu0 %739 }
  0x90   : > { %v828_v2 = vpop.permute.xlu1 %827 }
  0x92   : > { %v757_v6 = vpop.permute.xlu0 %756 }
  0x94   : > { %v770_v5 = vpop.permute.xlu1 %769 }
  0xe8   : > { %v530_v9 = vpop.f32.mrb[0].mxu0 }
  0xe9   : > { %v551_v10 = vmul.f32 %v544_v8, %v530_v9  ;;  %v532_v11 = vpop.f32.mrb[1].mxu0  ;;  %v627_v9 = vadd.s32 4294967295, %v613_v7 }
  0xea   : > { %v552_v13 = vmul.f32 %v544_v8, %v532_v11  ;;  %v1494_v14 = vpop.f32.mrb[2].mxu0  ;;  %v606_v8 = vand.u32 15, %v600_v1 }
  0xeb   : > { %v567_v15 = vadd.f32 %v560_v12, %v551_v10  ;;  %v1496_v16 = vpop.f32.mrb[3].mxu0  ;;  %vm629_vm4 = vcmp.ge.s32.totalorder %v627_v9, 0 }
  0xec   : > { %v568_v17 = vadd.f32 %v560_v12, %v552_v13  ;;  %v626_v12 = vadd.s32 4294967295, %v606_v8  ;;  %vm1567_vm9 = vmpackc.low %vm1383_vm8, %vm629_vm4 }
  0xed   : > { %v1196_v18 = vmul.f32 -1.442695, %v567_v15 }
  0xee   : > { %v1197_v19 = vmul.f32 -1.442695, %v568_v17  ;;  %vm628_vm5 = vcmp.ge.s32.totalorder %v626_v12, 0 }
  0xef   : > { %1317 = vpow2.f32 %v1196_v18  ;;  %v1559_v18 = vadd.s32 1, %v606_v8  ;;  %vm1573_vm10 = vmpackc.low %vm1383_vm8, %vm628_vm5 }
  0xf0   : > { %1319 = vpow2.f32 %v1197_v19 }
  0xf1   : > { %vm638_vm12 = vcmp.lt.s32.totalorder %v1559_v18, 16 }
  0xf2   : > { %vm1213_vm15 = vmpackc.low %vm628_vm5, %vm638_vm12 }
  0xf3   : > { %vm1219_vm5 = vmpackc.low %vm638_vm12, %vm1383_vm8 }
  0xf9   : > { %v1318_v20 = vpop.eup %1317 }
  0xfa   : > { %v1320_v21 = vpop.eup %1319  ;;  %v583_v22 = vadd.f32 1.0, %v1318_v20 }
  0xfb   : > { %v584_v23 = vadd.f32 1.0, %v1320_v21 }
  0xfc   : > { %1321 = vrcp.f32 %v583_v22 }
  0xfd   : > { %1323 = vrcp.f32 %v584_v23 }
 0x106   : > { %v1322_v24 = vpop.eup %1321 }
 0x107   : > { %v1324_v25 = vpop.eup %1323  ;;  %v1498_v26 = vmul.f32 %v1322_v24, %v567_v15 }
 0x108   : > { %v1500_v27 = vmul.f32 %v1324_v25, %v568_v17  ;;  %v1557_v17 = vadd.s32 1, %v613_v7 }
 0x109   : > { %v643_v28 = vpack.c.bf16 %v1498_v26, %v1498_v26 }
 0x10a   : > { %v644_v29 = vpack.c.bf16 %v1500_v27, %v1500_v27  ;;  %vm639_vm11 = vcmp.lt.s32.totalorder %v1557_v17, 16 }
 0x10b   : > { %v651_v30 = vsel %vm649_vm1, %v643_v28, 0  ;;  %vm1210_vm13 = vmpackc.low %vm629_vm4, %vm639_vm11  ;;  %vm807_vm4 = vcmask 924672  }
 0x10c   : > { %1200 = vmatprep.subr.msk.bf16.mxu1 %vm649_vm1, %v644_v29 }
 0x10d   : > { %657 = vmatpush1.bf16.msra.mxu1 %v651_v30 }
 0x110   : > { %1201 = vmatmul.mubr.msk.bf16.vlgmr.msra.gmra.mrb[0].mxu1 %vm645_vm2, %v642_v31 }
 0x111   : > { %996 = vmatprep.mubr.bf16.mxu1 %v1373_v0 }
 0x1e3   : > { %v690_v34 = vpop.f32.mrb[0].mxu1 }
 0x1e4   : > { %v703_v35 = vmul.f32 %v701_v33, %v690_v34  ;;  %v692_v36 = vpop.f32.mrb[1].mxu1 }
 0x1e5   : > { %v704_v38 = vmul.f32 %v701_v33, %v692_v36  ;;  %v694_v39 = vpop.f32.mrb[2].mxu1 }
 0x1e6   : > { %v711_v40 = vadd.f32 %v709_v37, %v703_v35  ;;  %v695_v41 = vpop.f32.mrb[3].mxu1 }
 0x1e7   : > { %v712_v42 = vadd.f32 %v709_v37, %v704_v38 }
 0x1e8   : > { %v1202_v43 = vmul.f32 -1.442695, %v711_v40 }
 0x1e9   : > { %v1203_v44 = vmul.f32 -1.442695, %v712_v42 }
 0x1ea   : > { %1325 = vpow2.f32 %v1202_v43 }
 0x1eb   : > { %1327 = vpow2.f32 %v1203_v44 }
 0x1f4   : > { %v1326_v45 = vpop.eup %1325 }
 0x1f5   : > { %v1328_v46 = vpop.eup %1327  ;;  %v719_v47 = vadd.f32 1.0, %v1326_v45 }
 0x1f6   : > { %v720_v48 = vadd.f32 1.0, %v1328_v46 }
 0x1f7   : > { %1329 = vrcp.f32 %v719_v47 }
 0x1f8   : > { %1331 = vrcp.f32 %v720_v48 }
 0x201   : > { %v1330_v49 = vpop.eup %1329 }
 0x202   : > { %v1332_v50 = vpop.eup %1331  ;;  %v1517_v51 = vmul.f32 %v1330_v49, %v711_v40 }
 0x203   : > { %v1519_v52 = vmul.f32 %v1332_v50, %v712_v42 }
 0x204   : > { %801 = vrot.lane.b32.xlu0 %v1517_v51, %s1379_s21  ;;  %788 = vrot.lane.b32.xlu1 %v1517_v51, %s1380_s22 }
 0x205   : > { %v1276_v53 = vpack.i.bf16 %v1519_v52, %v1517_v51  ;;  %v1291_v54 = vpack.i.bf16 %v1374_v32, %v1519_v52 }
 0x208   : > { %1277 = vrot.lane.b32.xlu1 %v1276_v53, %s1375_s17  ;;  %1272 = vrot.lane.b32.xlu0 %v1276_v53, %s1376_s18 }
 0x20c   : > { %1287 = vrot.lane.b32.xlu1 %v1276_v53, %s1377_s19  ;;  %1282 = vrot.lane.b32.xlu0 %v1276_v53, %s1378_s20  ;;  %s1245_s19 = sshll.u32 %s1659_s30, 5 }
 0x210   : > { %837 = vrot.lane.b32.xlu1 %v1517_v51, %s1381_s23  ;;  %1292 = vrot.lane.b32.xlu0 %v1291_v54, %s1380_s22  ;;  %s467_s22 = scalar_lea.vmem %s1653_s14, %s1245_s19 }
 0x214   : > { %1302 = vrot.lane.b32.xlu1 %v1291_v54, %s1381_s23  ;;  %1297 = vrot.lane.b32.xlu0 %v1291_v54, %s1379_s21 }
 0x218   : > { %818 = vrot.lane.b32.xlu1 %v1374_v32, %s1382_s24  ;;  %1307 = vrot.lane.b32.xlu0 %v1276_v53, %s1382_s24 }
 0x21c   : > { %564 = vperm.xlu1 %1270, %v556_v55   ;;  %548 = vperm.xlu0 %1269, %v540_v56  }
 0x220   : > { %921 = vperm.xlu1 %1270, %v918_v57   ;;  %913 = vperm.xlu0 %1269, %v910_v58  }
 0x224   : > { %1073 = vperm.xlu1 %1270, %v1065_v59   ;;  %1068 = vperm.xlu0 %1269, %v1064_v60  }
 0x228   : > { %1089 = vperm.xlu1 %1270, %v1081_v61   ;;  %1084 = vperm.xlu0 %1269, %v1080_v62  }
 0x276   : > { %v1555_v10 = vpop.permute.xlu0 %801  ;;  %v789_v11 = vpop.permute.xlu1 %788 }
 0x27a   : > { %v1278_v13 = vpop.permute.xlu1 %1277  ;;  %v1273_v15 = vpop.permute.xlu0 %1272 }
 0x27b   : > { %v1280_v19 = vunpack.i.h.bf16 %v1278_v13  ;;  %v1279_v20 = vunpack.i.l.bf16 %v1278_v13  ;;  %v1275_v21 = vunpack.i.h.bf16 %v1273_v15  ;;  %v1274_v22 = vunpack.i.l.bf16 %v1273_v15  ;;  %v858_v13 = vld [vmem:[%s1646_s7] sm:$0xf] }
 0x27d   : > { %v833_v23 = vsel %vm492_vm0, %v828_v2, %v1279_v20  ;;  %v834_v24 = vsel %vm492_vm0, %v1279_v20, %v1280_v19  ;;  %v746_v25 = vsel %vm745_vm3, %v740_v3, %v1274_v22  ;;  %v747_v28 = vsel %vm745_vm3, %v1274_v22, %v1275_v21  ;;  %vm1216_vm0 = vmpackc.low %vm639_vm11, %vm1383_vm8 }
 0x27e   : > { %v1205_v30 = vpack.c.bf16 %v834_v24, %v747_v28  ;;  %v1208_v31 = vpack.c.bf16 %v833_v23, %v746_v25  ;;  %v1288_v32 = vpop.permute.xlu1 %1287  ;;  %v1283_v33 = vpop.permute.xlu0 %1282  ;;  %vm843_vm3 = vcmask 916480  }
 0x27f   : > { %v1290_v35 = vunpack.i.h.bf16 %v1288_v32  ;;  %v1289_v36 = vunpack.i.l.bf16 %v1288_v32  ;;  %v1285_v37 = vunpack.i.h.bf16 %v1283_v33  ;;  %v1284_v38 = vunpack.i.l.bf16 %v1283_v33 }
 0x280   : > { %1206 = vmatprep.subr.msk.bf16.mxu0 %vm1567_vm9, %v1205_v30 }
 0x281   : > { %v776_v39 = vsel %vm775_vm6, %v770_v5, %v1289_v36  ;;  %v777_v40 = vsel %vm775_vm6, %v1289_v36, %v1290_v35  ;;  %v763_v41 = vsel %vm762_vm7, %v757_v6, %v1284_v38  ;;  %v764_v42 = vsel %vm762_vm7, %v1284_v38, %v1285_v37  ;;  %1209 = vmatpush1.bf16.msk.msra.mxu0 %vm1573_vm10, %v1208_v31  ;;  %v1315_v35 = vld [vmem:[%s1650_s11] sm:$0xff]  }
 0x282   : > { %v1211_v43 = vpack.c.bf16 %v777_v40, %v764_v42  ;;  %v1214_v44 = vpack.c.bf16 %v776_v39, %v763_v41  ;;  %v838_v45 = vpop.permute.xlu1 %837  ;;  %v1293_v46 = vpop.permute.xlu0 %1292  ;;  %vm820_vm6 = vcmask 908288   ;;  %vm859_vm7 = vcmask 588800  }
 0x283   : > { %v1295_v47 = vunpack.i.h.bf16 %v1293_v46  ;;  %v1294_v48 = vunpack.i.l.bf16 %v1293_v46 }
 0x284   : > { %1212 = vmatprep.subr.msk.bf16.mxu0 %vm1210_vm13, %v1211_v43 }
 0x285   : > { %v795_v49 = vsel %vm794_vm14, %v789_v11, %v1294_v48  ;;  %v796_v50 = vsel %vm794_vm14, %v1294_v48, %v1295_v47  ;;  %1215 = vmatpush1.bf16.msk.msra.mxu0 %vm1213_vm15, %v1214_v44 }
 0x286   : > { %v1217_v53 = vpack.c.bf16 %v796_v50, %v1519_v52  ;;  %v1220_v54 = vpack.c.bf16 %v795_v49, %v1517_v51  ;;  %v1303_v55 = vpop.permute.xlu1 %1302  ;;  %v1298_v56 = vpop.permute.xlu0 %1297 }
 0x287   : > { %v1305_v57 = vunpack.i.h.bf16 %v1303_v55  ;;  %v1304_v58 = vunpack.i.l.bf16 %v1303_v55  ;;  %v1300_v59 = vunpack.i.h.bf16 %v1298_v56  ;;  %v1299_v60 = vunpack.i.l.bf16 %v1298_v56 }
 0x288   : > { %1218 = vmatprep.subr.msk.bf16.mxu0 %vm1216_vm0, %v1217_v53 }
 0x289   : > { %v844_v61 = vsel %vm843_vm3, %v838_v45, %v1304_v58  ;;  %v845_v62 = vsel %vm843_vm3, %v1304_v58, %v1305_v57  ;;  %v808_v63 = vsel %vm807_vm4, %v1555_v10, %v1299_v60  ;;  %v809_v52 = vsel %vm807_vm4, %v1299_v60, %v1300_v59  ;;  %1221 = vmatpush1.bf16.msk.msra.mxu0 %vm1219_vm5, %v1220_v54 }
 0x28a   : > { %v1223_v51 = vpack.c.bf16 %v845_v62, %v809_v52  ;;  %v1226_v1 = vpack.c.bf16 %v844_v61, %v808_v63  ;;  %v1308_v2 = vpop.permute.xlu0 %1307  ;;  %v819_v3 = vpop.permute.xlu1 %818  ;;  %v1316_v62 = vld [vmem:[%s1649_s10] sm:$0xff]  }
 0x28b   : > { %v1310_v4 = vunpack.i.h.bf16 %v1308_v2  ;;  %v1309_v5 = vunpack.i.l.bf16 %v1308_v2 }
 0x28c   : > { %1224 = vmatprep.subr.msk.bf16.mxu0 %vm1567_vm9, %v1223_v51 }
 0x28d   : > { %v821_v6 = vsel %vm820_vm6, %v1309_v5, %v1310_v4  ;;  %v822_v7 = vsel %vm820_vm6, %v1310_v4, %v819_v3  ;;  %1227 = vmatpush1.bf16.msk.msra.mxu0 %vm1573_vm10, %v1226_v1 }
 0x28e   : > { %v826_v8 = vsel %vm639_vm11, %v822_v7, 0.0  ;;  %v825_v9 = vsel %vm638_vm12, %v821_v6, 0.0 }
 0x28f   : > { %v857_v10 = vpack.c.bf16 %v826_v8, %v826_v8  ;;  %v856_v11 = vpack.c.bf16 %v825_v9, %v825_v9 }
 0x291   : > { %1228 = vmatprep.subr.msk.bf16.mxu0 %vm649_vm1, %v857_v10  ;;  %v864_v12 = vsel %vm649_vm1, %v856_v11, 0 }
 0x292   : > { %878 = vmatpush1.bf16.msra.mxu0 %v864_v12 }
 0x295   : > { %1229 = vmatmul.mubr.msk.bf16.vlgmr.msra.gmra.mrb[4].mxu0 %vm859_vm7, %v858_v13 }
 0x29b   : > { %v549_v15 = vpop.permute.xlu0 %548  ;;  %v565_v18 = vpop.permute.xlu1 %564 }
 0x29c   : > { %v553_v17 = vmul.f32 %v549_v15, %v1494_v14  ;;  %v554_v19 = vmul.f32 %v549_v15, %v1496_v16 }
 0x29e   : > { %v569_v20 = vadd.f32 %v565_v18, %v553_v17  ;;  %v570_v21 = vadd.f32 %v565_v18, %v554_v19 }
 0x29f   : > { %v914_v36 = vpop.permute.xlu0 %913  ;;  %v922_v40 = vpop.permute.xlu1 %921 }
 0x2a0   : > { %v1198_v22 = vmul.f32 -1.442695, %v569_v20  ;;  %v1199_v23 = vmul.f32 -1.442695, %v570_v21 }
 0x2a2   : > { %1333 = vpow2.f32 %v1198_v22 }
 0x2a3   : > { %1335 = vpow2.f32 %v1199_v23  ;;  %v1069_v63 = vpop.permute.xlu0 %1068  ;;  %v1074_v52 = vpop.permute.xlu1 %1073 }
 0x2a7   : > { %v1085_v2 = vpop.permute.xlu0 %1084  ;;  %v1090_v7 = vpop.permute.xlu1 %1089 }
 0x2ac   : > { %v1334_v24 = vpop.eup %1333 }
 0x2ad   : > { %v1336_v25 = vpop.eup %1335  ;;  %v585_v28 = vadd.f32 1.0, %v1334_v24 }
 0x2ae   : > { %v586_v29 = vadd.f32 1.0, %v1336_v25 }
 0x2af   : > { %1337 = vrcp.f32 %v585_v28 }
 0x2b0   : > { %1339 = vrcp.f32 %v586_v29 }
 0x2b9   : > { %v1338_v30 = vpop.eup %1337 }
 0x2ba   : > { %v1340_v31 = vpop.eup %1339  ;;  %v597_v32 = vmul.f32 %v1338_v30, %v569_v20 }
 0x2bb   : > { %v598_v33 = vmul.f32 %v1340_v31, %v570_v21 }
 0x2bc   : > { %v948_v14 = vpack.c.bf16 %v597_v32, %v597_v32 }
 0x2bd   : > { %v949_v34 = vpack.c.bf16 %v598_v33, %v598_v33 }
 0x2be   : > { %v959_v16 = vsel %vm649_vm1, %v948_v14, 0 }
 0x2bf   : > { %1233 = vmatprep.subr.msk.bf16.mxu1 %vm649_vm1, %v949_v34 }
 0x2c0   : > { %965 = vmatpush1.bf16.msra.mxu1 %v959_v16 }
 0x2c3   : > { %1234 = vmatmul.mubr.msk.bf16.vlgmr.msra.gmra.mrb[4].mxu1 %vm645_vm2, %v1315_v35 }
 0x2c4   : > { %1053 = vmatprep.mubr.bf16.mxu1 %v1373_v0 }
 0x368   : > { %v903_v37 = vpop.f32.mrb[4].mxu0 }
 0x369   : > { %v916_v38 = vmul.f32 %v914_v36, %v903_v37  ;;  %v905_v39 = vpop.f32.mrb[5].mxu0 }
 0x36a   : > { %v917_v41 = vmul.f32 %v914_v36, %v905_v39  ;;  %v907_v42 = vpop.f32.mrb[6].mxu0 }
 0x36b   : > { %v924_v43 = vadd.f32 %v922_v40, %v916_v38  ;;  %v908_v44 = vpop.f32.mrb[7].mxu0 }
 0x36c   : > { %v925_v45 = vadd.f32 %v922_v40, %v917_v41 }
 0x36d   : > { %v1230_v46 = vmul.f32 -1.442695, %v924_v43 }
 0x36e   : > { %v1231_v47 = vmul.f32 -1.442695, %v925_v45 }
 0x36f   : > { %1341 = vpow2.f32 %v1230_v46 }
 0x370   : > { %1343 = vpow2.f32 %v1231_v47 }
 0x379   : > { %v1342_v48 = vpop.eup %1341 }
 0x37a   : > { %v1344_v49 = vpop.eup %1343  ;;  %v932_v50 = vadd.f32 1.0, %v1342_v48 }
 0x37b   : > { %v933_v53 = vadd.f32 1.0, %v1344_v49 }
 0x37c   : > { %1345 = vrcp.f32 %v932_v50 }
 0x37d   : > { %1347 = vrcp.f32 %v933_v53 }
 0x386   : > { %v1346_v0 = vpop.eup %1345 }
 0x387   : > { %v1348_v54 = vpop.eup %1347  ;;  %v938_v55 = vmul.f32 %v1346_v0, %v924_v43 }
 0x388   : > { %v939_v56 = vmul.f32 %v1348_v54, %v925_v45 }
 0x389   : > { %v940_v57 = vadd.f32 %v938_v55, %v1498_v26 }
 0x38a   : > { %v941_v58 = vadd.f32 %v939_v56, %v1500_v27 }
 0x38b   : > { %v944_v59 = vpack.c.bf16 %v940_v57, %v940_v57 }
 0x38c   : > { %v945_v60 = vpack.c.bf16 %v941_v58, %v941_v58 }
 0x38d   : > { %v1016_v61 = vsel %vm649_vm1, %v944_v59, 0 }
 0x38e   : > { %1236 = vmatprep.subr.msk.bf16.mxu1 %vm649_vm1, %v945_v60 }
 0x38f   : > { %1022 = vmatpush1.bf16.msra.mxu1 %v1016_v61 }
 0x392   : > { %1237 = vmatmul.mubr.msk.bf16.vlgmr.msra.gmra.mrb[4].mxu1 %vm645_vm2, %v1316_v62 }
 0x465   : > { %v1055_v51 = vpop.f32.mrb[4].mxu1 }
 0x466   : > { %v1076_v1 = vmul.f32 %v1069_v63, %v1055_v51  ;;  %v1057_v26 = vpop.f32.mrb[5].mxu1 }
 0x467   : > { %v1077_v27 = vmul.f32 %v1069_v63, %v1057_v26  ;;  %v1059_v3 = vpop.f32.mrb[6].mxu1 }
 0x468   : > { %v1092_v4 = vadd.f32 %v1085_v2, %v1076_v1  ;;  %v1078_v5 = vmul.f32 %v1074_v52, %v1059_v3  ;;  %v1061_v6 = vpop.f32.mrb[7].mxu1 }
 0x469   : > { %v1093_v8 = vadd.f32 %v1085_v2, %v1077_v27  ;;  %v1079_v9 = vmul.f32 %v1074_v52, %v1061_v6 }
 0x46a   : > { %v1238_v10 = vmul.f32 -1.442695, %v1092_v4  ;;  %v1094_v11 = vadd.f32 %v1090_v7, %v1078_v5 }
 0x46b   : > { %v1239_v12 = vmul.f32 -1.442695, %v1093_v8  ;;  %v1095_v13 = vadd.f32 %v1090_v7, %v1079_v9 }
 0x46c   : > { %1349 = vpow2.f32 %v1238_v10  ;;  %v1240_v15 = vmul.f32 -1.442695, %v1094_v11 }
 0x46d   : > { %1351 = vpow2.f32 %v1239_v12  ;;  %v1241_v17 = vmul.f32 -1.442695, %v1095_v13 }
 0x46e   : > { %1353 = vpow2.f32 %v1240_v15 }
 0x46f   : > { %1355 = vpow2.f32 %v1241_v17 }
 0x476   : > { %v1350_v19 = vpop.eup %1349 }
 0x477   : > { %v1352_v18 = vpop.eup %1351  ;;  %v1108_v20 = vadd.f32 1.0, %v1350_v19 }
 0x478   : > { %v1354_v21 = vpop.eup %1353  ;;  %v1109_v22 = vadd.f32 1.0, %v1352_v18 }
 0x479   : > { %v1356_v23 = vpop.eup %1355  ;;  %1357 = vrcp.f32 %v1108_v20  ;;  %v1110_v24 = vadd.f32 1.0, %v1354_v21 }
 0x47a   : > { %1359 = vrcp.f32 %v1109_v22  ;;  %v1111_v25 = vadd.f32 1.0, %v1356_v23 }
 0x47b   : > { %1361 = vrcp.f32 %v1110_v24 }
 0x47c   : > { %1363 = vrcp.f32 %v1111_v25 }
 0x483   : > { %v1358_v28 = vpop.eup %1357 }
 0x484   : > { %v1360_v29 = vpop.eup %1359  ;;  %v1120_v30 = vmul.f32 %v1358_v28, %v1092_v4 }
 0x485   : > { %v1362_v31 = vpop.eup %1361  ;;  %v1121_v32 = vmul.f32 %v1360_v29, %v1093_v8 }
 0x486   : > { %v1364_v33 = vpop.eup %1363  ;;  %1124 = vst [vmem:[%s467_s22] sm:$0xff] %v1120_v30  ;;  %v1122_v14 = vmul.f32 %v1362_v31, %v1094_v11 }
 0x487   : > { %1125 = vst [vmem:[%s467_s22 + $0x8] sm:$0xff] %v1121_v32  ;;  %v1123_v34 = vmul.f32 %v1364_v33, %v1095_v13 }
 0x488   : > { %1126 = vst [vmem:[%s467_s22 + $0x10] sm:$0xff] %v1122_v14 }
 0x489   : > { %1127 = vst [vmem:[%s467_s22 + $0x18] sm:$0xff] %v1123_v34 }
 0x48a PF: > { %s24_s29 = sadd.s32 1, %s1371_s29  }
 0x48b   : > { %p21_p4 = scmp.ge.s32.totalorder %s24_s29, 4  }
 0x48d   :  { %23 = sbr.rel (!%p21_p4) target bundleno = 1 (0x1), region = 106 }

</bundles_post_ra>
